<compile_context>
chip_gen: v7x
topology: tpu7x:2x2x1
jax: 0.10.0
libtpu: 0.0.40
codegen_flags: <defaults>
</compile_context>

<pallas_src>
import functools

import jax
import jax.numpy as jnp
import numpy as np
from jax.experimental import pallas as pl
from jax.experimental.pallas import tpu as pltpu

LANES = 128          # TPU lane width; hidden/output dims are padded to this
IN_FEATURES = 3072   # fc1 input width (3*32*32), fixed by the module
HIDDEN = 20
NUM_CLASSES = 2
MSIGN_SCALE = 0.2236
TM_MAX = 1024        # max batch-tile rows (6 MiB bf16 x tile per step)


def _round_up(x, m):
    return (x + m - 1) // m * m


def _pad_to(a, shape):
    return jnp.pad(a, [(0, t - s) for s, t in zip(a.shape, shape)])


def _sign_f32(v):
    # torch.sign semantics: -1 / 0 / +1 (plain VPU compare+select, no EUP).
    return jnp.where(v > 0.0, 1.0, jnp.where(v < 0.0, -1.0, 0.0)).astype(jnp.float32)


# ---------------------------------------------------------------------------
# Fused Pallas kernel: fc1 -> sign*0.2236 -> fc2 -> sign*0.2236 -> fc3 -> signb
# ---------------------------------------------------------------------------
def _mlp2ss_kernel(x_ref, w1_ref, b1_ref, w2_ref, b2_ref, w3_ref, b3_ref, o_ref):
    scale = jnp.float32(MSIGN_SCALE)

    # fc1: (tm, 3072)bf16 @ (3072, 128)bf16 -> f32 accumulation on the MXU.
    h = jnp.dot(x_ref[...], w1_ref[...],
                preferred_element_type=jnp.float32) + b1_ref[...]
    h = _sign_f32(h) * scale                      # msign(out) * 0.2236

    # fc2: (tm, 128) @ (128, 128) -- intermediates never leave VMEM/vregs.
    h = jnp.dot(h.astype(jnp.bfloat16), w2_ref[...],
                preferred_element_type=jnp.float32) + b2_ref[...]
    h = _sign_f32(h) * scale                      # msign(out) * 0.2236

    # fc3: (tm, 128) @ (128, 128)
    h = jnp.dot(h.astype(jnp.bfloat16), w3_ref[...],
                preferred_element_type=jnp.float32) + b3_ref[...]

    # signb(out) = relu(sign(out)) -> {0,1}; bf16 lane-dense 128-wide store.
    o_ref[...] = jnp.where(h > 0.0, 1.0, 0.0).astype(o_ref.dtype)


def _choose_tiling(B):
    """Return (tm, B_pad): tm multiple of 16 (bf16 packing), B_pad = tm * steps.

    Even step count >= 2 whenever possible (v7x dual-TC parity); padding is at
    most ~16 rows per step; tm grows up to TM_MAX for large batches.
    """
    B16 = _round_up(max(B, 1), 16)
    if B16 < 32:
        return B16, B16                    # tiny batch: single 16-row tile
    steps = max(2, pl.cdiv(B16, TM_MAX))
    steps += steps % 2                     # even -> both v7x TCs get equal work
    tm = _round_up(pl.cdiv(B16, steps), 16)
    return tm, tm * steps


def prepare_params(params):
    """One-time weight prep (hoisted out of the per-call path).

    Transposes PyTorch-layout (out, in) weights to (in, out), zero-pads the
    20 / num_classes dims to 128 lanes and casts weights to bf16.  Zero padding
    is exact: padded lanes stay exactly 0 through sign() at every layer.
    """
    D = params["w1"].shape[1]
    prepared = {
        "w1": _pad_to(params["w1"].T, (D, LANES)).astype(jnp.bfloat16),
        "b1": _pad_to(params["b1"][None, :], (1, LANES)).astype(jnp.float32),
        "w2": _pad_to(params["w2"].T, (LANES, LANES)).astype(jnp.bfloat16),
        "b2": _pad_to(params["b2"][None, :], (1, LANES)).astype(jnp.float32),
        "w3": _pad_to(params["w3"].T, (LANES, LANES)).astype(jnp.bfloat16),
        "b3": _pad_to(params["b3"][None, :], (1, LANES)).astype(jnp.float32),
    }
    return prepared, int(params["w3"].shape[0])


@functools.partial(jax.jit, static_argnums=(2,))
def mlp2ssscale_forward(x, prepared, num_classes=NUM_CLASSES):
    """x: (B, 3072); prepared: output of prepare_params().

    Returns (B, num_classes) float32 in {0, 1}.
    """
    B, D = x.shape
    tm, B_pad = _choose_tiling(B)
    grid = (B_pad // tm,)

    # Single fused cast(+pad): the kernel consumes a bf16 activation stream.
    # When B_pad == B this is just the f32->bf16 convert (no extra pad copy).
    x_bf = x if x.dtype == jnp.bfloat16 else x.astype(jnp.bfloat16)
    if B_pad != B:
        x_bf = jnp.pad(x_bf, ((0, B_pad - B), (0, 0)))

    flops = 2 * B_pad * (D * LANES + 2 * LANES * LANES)
    bytes_accessed = (B_pad * D * 2                      # bf16 x read
                      + (D + 2 * LANES) * LANES * 2      # bf16 weights
                      + 3 * LANES * 4                    # f32 biases
                      + B_pad * LANES * 2)               # bf16 out write

    out = pl.pallas_call(
        _mlp2ss_kernel,
        out_shape=jax.ShapeDtypeStruct((B_pad, LANES), jnp.bfloat16),
        grid=grid,
        in_specs=[
            pl.BlockSpec((tm, D), lambda i: (i, 0)),          # x tile (bf16)
            pl.BlockSpec((D, LANES), lambda i: (0, 0)),       # w1 (resident)
            pl.BlockSpec((1, LANES), lambda i: (0, 0)),       # b1
            pl.BlockSpec((LANES, LANES), lambda i: (0, 0)),   # w2
            pl.BlockSpec((1, LANES), lambda i: (0, 0)),       # b2
            pl.BlockSpec((LANES, LANES), lambda i: (0, 0)),   # w3
            pl.BlockSpec((1, LANES), lambda i: (0, 0)),       # b3
        ],
        out_specs=pl.BlockSpec((tm, LANES), lambda i: (i, 0)),
        compiler_params=pltpu.CompilerParams(
            dimension_semantics=("parallel",),
            vmem_limit_bytes=32 * 1024 * 1024,
        ),
        cost_estimate=pl.CostEstimate(
            flops=flops, transcendentals=0, bytes_accessed=bytes_accessed),
    )(x_bf, prepared["w1"], prepared["b1"], prepared["w2"], prepared["b2"],
      prepared["w3"], prepared["b3"])

    # Tiny (B, num_classes) slice; padded rows/lanes are discarded here.
    return out[:B, :num_classes].astype(jnp.float32)


# ---------------------------------------------------------------------------
# Parameter init (matches _weights_init: xavier_normal_ weights, zero biases)
# ---------------------------------------------------------------------------
def init_params(key, num_classes=NUM_CLASSES):
    def xavier(k, out_f, in_f):
        std = (2.0 / (in_f + out_f)) ** 0.5
        return std * jax.random.normal(k, (out_f, in_f), jnp.float32)

    k1, k2, k3 = jax.random.split(key, 3)
    return {
        "w1": xavier(k1, HIDDEN, IN_FEATURES),
        "b1": jnp.zeros((HIDDEN,), jnp.float32),
        "w2": xavier(k2, HIDDEN, HIDDEN),
        "b2": jnp.zeros((HIDDEN,), jnp.float32),
        "w3": xavier(k3, num_classes, HIDDEN),
        "b3": jnp.zeros((num_classes,), jnp.float32),
    }


# ---------------------------------------------------------------------------
# Pure-JAX reference (same bf16-feed / f32-accumulate numerics as the kernel)
# ---------------------------------------------------------------------------
def reference_forward(x, params):
    def dot_bf16(a, w):  # w is PyTorch-layout (out, in)
        return jnp.dot(a.astype(jnp.bfloat16), w.T.astype(jnp.bfloat16),
                       preferred_element_type=jnp.float32)

    h = dot_bf16(x, params["w1"]) + params["b1"]
    h = _sign_f32(h) * jnp.float32(MSIGN_SCALE)
    h = dot_bf16(h, params["w2"]) + params["b2"]
    h = _sign_f32(h) * jnp.float32(MSIGN_SCALE)
    h = dot_bf16(h, params["w3"]) + params["b3"]
    return jnp.where(h > 0.0, 1.0, 0.0).astype(jnp.float32)


if __name__ == "__main__":
    key = jax.random.PRNGKey(0)
    pkey, xkey = jax.random.split(key)
    params = init_params(pkey, num_classes=NUM_CLASSES)
    prepared, num_classes = prepare_params(params)   # one-time weight prep

    # Input consistent with the module: fc1 expects 3072 features; small batch.
    x = jax.random.normal(xkey, (2, IN_FEATURES), jnp.float32)

    out = mlp2ssscale_forward(x, prepared, num_classes)
    out = jax.block_until_ready(out)
    assert out.shape == (2, num_classes), out.shape

    ref = reference_forward(x, params)
    np.testing.assert_allclose(np.asarray(out), np.asarray(ref), rtol=0, atol=1e-6)

    print("KERNEL_OK")
</pallas_src>

<mosaic_0001>
module attributes {stable_mosaic.version = 11 : i64} {
  func.func @_mlp2ss_kernel(%arg0: i32, %arg1: memref<16x3072xbf16, #tpu.memory_space<vmem>>, %arg2: memref<3072x128xbf16, #tpu.memory_space<vmem>>, %arg3: memref<1x128xf32, #tpu.memory_space<vmem>>, %arg4: memref<128x128xbf16, #tpu.memory_space<vmem>>, %arg5: memref<1x128xf32, #tpu.memory_space<vmem>>, %arg6: memref<128x128xbf16, #tpu.memory_space<vmem>>, %arg7: memref<1x128xf32, #tpu.memory_space<vmem>>, %arg8: memref<16x128xbf16, #tpu.memory_space<vmem>>) attributes {dimension_semantics = [#tpu.dimension_semantics<parallel>], iteration_bounds = array<i64: 1>, scalar_prefetch = 0 : i64, scratch_operands = 0 : i64, tpu.core_type = #tpu.core_type<tc>, window_params = [{transform_indices = @transform_0, window_bounds = array<i64: 16, 3072>}, {pipeline_mode = #tpu.pipeline_mode<synchronous>, transform_indices = @transform_1, window_bounds = array<i64: 3072, 128>}, {pipeline_mode = #tpu.pipeline_mode<synchronous>, transform_indices = @transform_2, window_bounds = array<i64: 1, 128>}, {pipeline_mode = #tpu.pipeline_mode<synchronous>, transform_indices = @transform_3, window_bounds = array<i64: 128, 128>}, {pipeline_mode = #tpu.pipeline_mode<synchronous>, transform_indices = @transform_4, window_bounds = array<i64: 1, 128>}, {pipeline_mode = #tpu.pipeline_mode<synchronous>, transform_indices = @transform_5, window_bounds = array<i64: 128, 128>}, {pipeline_mode = #tpu.pipeline_mode<synchronous>, transform_indices = @transform_6, window_bounds = array<i64: 1, 128>}, {transform_indices = @transform_7, window_bounds = array<i64: 16, 128>}]} {
    %c0 = arith.constant 0 : index
    %c0_0 = arith.constant 0 : index
    %0 = vector.load %arg1[%c0, %c0_0] : memref<16x3072xbf16, #tpu.memory_space<vmem>>, vector<16x3072xbf16>
    %c0_1 = arith.constant 0 : index
    %c0_2 = arith.constant 0 : index
    %1 = vector.load %arg2[%c0_1, %c0_2] : memref<3072x128xbf16, #tpu.memory_space<vmem>>, vector<3072x128xbf16>
    %cst = arith.constant dense<0.000000e+00> : vector<16x128xf32>
    %2 = tpu.matmul %0, %1, %cst {dimension_numbers = #tpu.dot_dimension_numbers<[1], [0], [0], [1], [0, 0, 1, 1], [], []>} : vector<16x3072xbf16>, vector<3072x128xbf16>, vector<16x128xf32> -> vector<16x128xf32>
    %c0_3 = arith.constant 0 : index
    %c0_4 = arith.constant 0 : index
    %3 = vector.load %arg3[%c0_3, %c0_4] : memref<1x128xf32, #tpu.memory_space<vmem>>, vector<1x128xf32>
    %4 = vector.broadcast %3 : vector<1x128xf32> to vector<16x128xf32>
    %5 = arith.addf %2, %4 : vector<16x128xf32>
    %cst_5 = arith.constant 0.000000e+00 : f32
    %6 = vector.broadcast %cst_5 : f32 to vector<16x128xf32>
    %7 = arith.cmpf ogt, %5, %6 : vector<16x128xf32>
    %cst_6 = arith.constant 0.000000e+00 : f32
    %8 = vector.broadcast %cst_6 : f32 to vector<16x128xf32>
    %9 = arith.cmpf olt, %5, %8 : vector<16x128xf32>
    %cst_7 = arith.constant -1.000000e+00 : f32
    %cst_8 = arith.constant 0.000000e+00 : f32
    %10 = vector.broadcast %cst_7 : f32 to vector<16x128xf32>
    %11 = vector.broadcast %cst_8 : f32 to vector<16x128xf32>
    %12 = arith.select %9, %10, %11 : vector<16x128xi1>, vector<16x128xf32>
    %cst_9 = arith.constant 1.000000e+00 : f32
    %13 = vector.broadcast %cst_9 : f32 to vector<16x128xf32>
    %14 = arith.select %7, %13, %12 : vector<16x128xi1>, vector<16x128xf32>
    %cst_10 = arith.constant 2.236000e-01 : f32
    %15 = vector.broadcast %cst_10 : f32 to vector<16x128xf32>
    %16 = arith.mulf %14, %15 : vector<16x128xf32>
    %17 = arith.truncf %16 : vector<16x128xf32> to vector<16x128xbf16>
    %c0_11 = arith.constant 0 : index
    %c0_12 = arith.constant 0 : index
    %18 = vector.load %arg4[%c0_11, %c0_12] : memref<128x128xbf16, #tpu.memory_space<vmem>>, vector<128x128xbf16>
    %cst_13 = arith.constant dense<0.000000e+00> : vector<16x128xf32>
    %19 = tpu.matmul %17, %18, %cst_13 {dimension_numbers = #tpu.dot_dimension_numbers<[1], [0], [0], [1], [0, 0, 1, 1], [], []>} : vector<16x128xbf16>, vector<128x128xbf16>, vector<16x128xf32> -> vector<16x128xf32>
    %c0_14 = arith.constant 0 : index
    %c0_15 = arith.constant 0 : index
    %20 = vector.load %arg5[%c0_14, %c0_15] : memref<1x128xf32, #tpu.memory_space<vmem>>, vector<1x128xf32>
    %21 = vector.broadcast %20 : vector<1x128xf32> to vector<16x128xf32>
    %22 = arith.addf %19, %21 : vector<16x128xf32>
    %cst_16 = arith.constant 0.000000e+00 : f32
    %23 = vector.broadcast %cst_16 : f32 to vector<16x128xf32>
    %24 = arith.cmpf ogt, %22, %23 : vector<16x128xf32>
    %cst_17 = arith.constant 0.000000e+00 : f32
    %25 = vector.broadcast %cst_17 : f32 to vector<16x128xf32>
    %26 = arith.cmpf olt, %22, %25 : vector<16x128xf32>
    %cst_18 = arith.constant -1.000000e+00 : f32
    %cst_19 = arith.constant 0.000000e+00 : f32
    %27 = vector.broadcast %cst_18 : f32 to vector<16x128xf32>
    %28 = vector.broadcast %cst_19 : f32 to vector<16x128xf32>
    %29 = arith.select %26, %27, %28 : vector<16x128xi1>, vector<16x128xf32>
    %cst_20 = arith.constant 1.000000e+00 : f32
    %30 = vector.broadcast %cst_20 : f32 to vector<16x128xf32>
    %31 = arith.select %24, %30, %29 : vector<16x128xi1>, vector<16x128xf32>
    %cst_21 = arith.constant 2.236000e-01 : f32
    %32 = vector.broadcast %cst_21 : f32 to vector<16x128xf32>
    %33 = arith.mulf %31, %32 : vector<16x128xf32>
    %34 = arith.truncf %33 : vector<16x128xf32> to vector<16x128xbf16>
    %c0_22 = arith.constant 0 : index
    %c0_23 = arith.constant 0 : index
    %35 = vector.load %arg6[%c0_22, %c0_23] : memref<128x128xbf16, #tpu.memory_space<vmem>>, vector<128x128xbf16>
    %cst_24 = arith.constant dense<0.000000e+00> : vector<16x128xf32>
    %36 = tpu.matmul %34, %35, %cst_24 {dimension_numbers = #tpu.dot_dimension_numbers<[1], [0], [0], [1], [0, 0, 1, 1], [], []>} : vector<16x128xbf16>, vector<128x128xbf16>, vector<16x128xf32> -> vector<16x128xf32>
    %c0_25 = arith.constant 0 : index
    %c0_26 = arith.constant 0 : index
    %37 = vector.load %arg7[%c0_25, %c0_26] : memref<1x128xf32, #tpu.memory_space<vmem>>, vector<1x128xf32>
    %38 = vector.broadcast %37 : vector<1x128xf32> to vector<16x128xf32>
    %39 = arith.addf %36, %38 : vector<16x128xf32>
    %cst_27 = arith.constant 0.000000e+00 : f32
    %40 = vector.broadcast %cst_27 : f32 to vector<16x128xf32>
    %41 = arith.cmpf ogt, %39, %40 : vector<16x128xf32>
    %cst_28 = arith.constant 1.000000e+00 : f32
    %cst_29 = arith.constant 0.000000e+00 : f32
    %42 = vector.broadcast %cst_28 : f32 to vector<16x128xf32>
    %43 = vector.broadcast %cst_29 : f32 to vector<16x128xf32>
    %44 = arith.select %41, %42, %43 : vector<16x128xi1>, vector<16x128xf32>
    %45 = arith.truncf %44 : vector<16x128xf32> to vector<16x128xbf16>
    %c0_30 = arith.constant 0 : index
    %c0_31 = arith.constant 0 : index
    %46 = vector.load %arg8[%c0_30, %c0_31] : memref<16x128xbf16, #tpu.memory_space<vmem>>, vector<16x128xbf16>
    tpu.vector_store %arg8[%c0_30, %c0_31], %45 {strides = array<i32>} : memref<16x128xbf16, #tpu.memory_space<vmem>>, vector<16x128xbf16>,
    return
  }
  func.func @transform_0(%arg0: i32) -> (i32, i32) {
    %c0_i32 = arith.constant 0 : i32
    %c0_i32_0 = arith.constant 0 : i32
    return %arg0, %c0_i32 : i32, i32
  }
  func.func @transform_1(%arg0: i32) -> (i32, i32) {
    %c0_i32 = arith.constant 0 : i32
    %c0_i32_0 = arith.constant 0 : i32
    %c0_i32_1 = arith.constant 0 : i32
    return %c0_i32, %c0_i32_0 : i32, i32
  }
  func.func @transform_2(%arg0: i32) -> (i32, i32) {
    %c0_i32 = arith.constant 0 : i32
    %c0_i32_0 = arith.constant 0 : i32
    %c0_i32_1 = arith.constant 0 : i32
    return %c0_i32, %c0_i32_0 : i32, i32
  }
  func.func @transform_3(%arg0: i32) -> (i32, i32) {
    %c0_i32 = arith.constant 0 : i32
    %c0_i32_0 = arith.constant 0 : i32
    %c0_i32_1 = arith.constant 0 : i32
    return %c0_i32, %c0_i32_0 : i32, i32
  }
  func.func @transform_4(%arg0: i32) -> (i32, i32) {
    %c0_i32 = arith.constant 0 : i32
    %c0_i32_0 = arith.constant 0 : i32
    %c0_i32_1 = arith.constant 0 : i32
    return %c0_i32, %c0_i32_0 : i32, i32
  }
  func.func @transform_5(%arg0: i32) -> (i32, i32) {
    %c0_i32 = arith.constant 0 : i32
    %c0_i32_0 = arith.constant 0 : i32
    %c0_i32_1 = arith.constant 0 : i32
    return %c0_i32, %c0_i32_0 : i32, i32
  }
  func.func @transform_6(%arg0: i32) -> (i32, i32) {
    %c0_i32 = arith.constant 0 : i32
    %c0_i32_0 = arith.constant 0 : i32
    %c0_i32_1 = arith.constant 0 : i32
    return %c0_i32, %c0_i32_0 : i32, i32
  }
  func.func @transform_7(%arg0: i32) -> (i32, i32) {
    %c0_i32 = arith.constant 0 : i32
    %c0_i32_0 = arith.constant 0 : i32
    return %arg0, %c0_i32 : i32, i32
  }
}

</mosaic_0001>

<bundles_post_ra>
// kernel: mlp2ssscale_forward.1
= control target key start
LH: loop header
LB: loop body
LE: loop exit
PB: predicated region body
PF: predicated region fallthrough
CT: control target
= control target key end

     0   :  { %12 = vsyncpa [#allocation3], 0  ;;  %s3286_s24 = smov [#allocation2]   ;;  %s3499_s0 = inlined_call_operand.vmem [shape: bf16[16,3072], index: 0, kind: input, shape index: {}]   ;;  %s3500_s1 = inlined_call_operand.hbm [shape: bf16[3072,128], index: 1, kind: input, shape index: {}]   ;;  %s3501_s2 = inlined_call_operand.vmem [shape: f32[1,128], index: 2, kind: input, shape index: {}]   ;;  %s3502_s3 = inlined_call_operand.vmem [shape: bf16[128,128], index: 3, kind: input, shape index: {}]   ;;  %s3503_s4 = inlined_call_operand.vmem [shape: f32[1,128], index: 4, kind: input, shape index: {}]   ;;  %s3504_s5 = inlined_call_operand.vmem [shape: bf16[128,128], index: 5, kind: input, shape index: {}]   ;;  %s3505_s6 = inlined_call_operand.vmem [shape: f32[1,128], index: 6, kind: input, shape index: {}]   ;;  %s3506_s7 = inlined_call_operand.vmem [shape: bf16[16,128], index: 7, kind: output, shape index: {}]  }
   0x1   :  { %s20_s25 = sshll.u32 %s3286_s24, 4  ;;  %s3262_s28 = scalar_lea.hbm %s3500_s1, 24576  ;;  %s21_s25 = int_to_ptr.vmem [resolvable:$true] %s20_s25 }
   0x2   :  { %p3263_p0 = scmp.ne.s32.totalorder %s3500_s1, %s3262_s28  ;;  %p3266_p1 = scmp.lt.u32.totalorder %s3262_s28, %s3500_s1 }
   0x4   :  { %p3268_p2 = pnand %p3266_p1, %p3263_p0 }
   0x6   :  { %3271 = shalt.err (!%p3268_p2)
}
   0x7   :  { %s3272_s10 = scalar_lea.vmem %s21_s25, 24576  ;;  %p3277_p4 = scmp.lt.s32.totalorder %s21_s25, %s21_s25 }
   0x8   :  { %p3273_p3 = scmp.ne.s32.totalorder %s21_s25, %s3272_s10  ;;  %p3278_p5 = scmp.lt.s32.totalorder %s3272_s10, %s3272_s10 }
   0xa   :  { %p3279_p6 = por %p3278_p5, %p3277_p4 }
   0xc   :  { %p3280_p7 = pnand %p3279_p6, %p3273_p3 }
   0xe   :  { %3283 = shalt.err (!%p3280_p7)
}
   0xf   :  { %s3287_s11 = smov 64   ;;  %s3288_s12 = smov 4  }
  0x10   :  { %26 = dma.hbm_to_vmem [thread:$0]  %s3500_s1, 24576, %s21_s25, [#allocation3], %s3287_s11, %s3287_s11, %s3288_s12  }
  0x11   :  { %3284 = dma.done.wait [#allocation3], 24576  }
  0x12   :  { %3285 = vsyncadd [#allocation3], 4294942720  ;;  %v3054_v0 = vld [vmem:[#allocation2 + $0x40] sm:$0xff]   ;;  %v3058_v4 = vld [vmem:[#allocation2 + $0x48] sm:$0xff]   ;;  %vm3290_vm0 = vmmov 0  }
  0x13   :  { %v3055_v1 = vld [vmem:[#allocation2 + $0xc0] sm:$0xff]   ;;  %2727 = vmatprep.subr.bf16.mxu0 %v3054_v0  ;;  %v3059_v5 = vld [vmem:[#allocation2 + $0xc8] sm:$0xff]   ;;  %v3062_v8 = vld [vmem:[#allocation2 + $0x50] sm:$0xff]  }
  0x14   :  { %v3056_v2 = vld [vmem:[#allocation2] sm:$0xff]   ;;  %2749 = vmatprep.subr.bf16.mxu1 %v3055_v1  ;;  %v3060_v6 = vld [vmem:[#allocation2 + $0x8] sm:$0xff]   ;;  %v3063_v9 = vld [vmem:[#allocation2 + $0xd0] sm:$0xff]  }
  0x15   :  { %v3057_v3 = vld [vmem:[#allocation2 + $0x80] sm:$0xff]   ;;  %2728 = vmatpush3.bf16.msra.mxu0 %v3056_v2  ;;  %v3061_v7 = vld [vmem:[#allocation2 + $0x88] sm:$0xff]   ;;  %v3064_v10 = vld [vmem:[#allocation2 + $0x10] sm:$0xff]  }
  0x16   :  { %2750 = vmatpush3.bf16.msra.mxu1 %v3057_v3  ;;  %2729 = vmatprep.subr.bf16.mxu0 %v3058_v4  ;;  %v3065_v11 = vld [vmem:[#allocation2 + $0x90] sm:$0xff]   ;;  %v3066_v12 = vld [vmem:[#allocation2 + $0x58] sm:$0xff]   ;;  %v3070_v16 = vld [vmem:[#allocation2 + $0x60] sm:$0xff]  }
  0x17   :  { %2751 = vmatprep.subr.bf16.mxu1 %v3059_v5  ;;  %v3067_v13 = vld [vmem:[#allocation2 + $0xd8] sm:$0xff]   ;;  %v3071_v17 = vld [vmem:[#allocation2 + $0xe0] sm:$0xff]   ;;  %v3074_v20 = vld [vmem:[#allocation2 + $0x68] sm:$0xff]  }
  0x18   :  { %v3068_v14 = vld [vmem:[#allocation2 + $0x18] sm:$0xff]   ;;  %v3072_v18 = vld [vmem:[#allocation2 + $0x20] sm:$0xff]   ;;  %v3075_v21 = vld [vmem:[#allocation2 + $0xe8] sm:$0xff]  }
  0x19   :  { %2730 = vmatpush3.bf16.msra.mxu0 %v3060_v6  ;;  %v3069_v15 = vld [vmem:[#allocation2 + $0x98] sm:$0xff]   ;;  %v3073_v19 = vld [vmem:[#allocation2 + $0xa0] sm:$0xff]   ;;  %v3076_v22 = vld [vmem:[#allocation2 + $0x28] sm:$0xff]  }
  0x1a   :  { %2752 = vmatpush3.bf16.msra.mxu1 %v3061_v7  ;;  %2731 = vmatprep.subr.bf16.mxu0 %v3062_v8  ;;  %v3077_v23 = vld [vmem:[#allocation2 + $0xa8] sm:$0xff]   ;;  %v3078_v24 = vld [vmem:[#allocation2 + $0x70] sm:$0xff]   ;;  %v3082_v28 = vld [vmem:[#allocation2 + $0x78] sm:$0xff]  }
  0x1b   :  { %2753 = vmatprep.subr.bf16.mxu1 %v3063_v9  ;;  %v3079_v25 = vld [vmem:[#allocation2 + $0xf0] sm:$0xff]   ;;  %v3083_v29 = vld [vmem:[#allocation2 + $0xf8] sm:$0xff]   ;;  %v41_v32 = vld [vmem:[%s3499_s0] sm:$0xff] }
  0x1c   :  { %v3080_v26 = vld [vmem:[#allocation2 + $0x30] sm:$0xff]   ;;  %v3084_v30 = vld [vmem:[#allocation2 + $0x38] sm:$0xff]   ;;  %v53_v33 = vld [vmem:[%s3499_s0 + $0x60] sm:$0xff] }
  0x1d   :  { %2732 = vmatpush3.bf16.msra.mxu0 %v3064_v10  ;;  %v3081_v27 = vld [vmem:[#allocation2 + $0xb0] sm:$0xff]   ;;  %v3085_v31 = vld [vmem:[#allocation2 + $0xb8] sm:$0xff]   ;;  %v42_v34 = vld [vmem:[%s3499_s0 + $0x8] sm:$0xff]  ;;  %v2486_v35 = vcombine.low %v41_v32, %v53_v33  ;;  %v2487_v36 = vcombine.high %v41_v32, %v53_v33 }
  0x1e   :  { %2754 = vmatpush3.bf16.msra.mxu1 %v3065_v11  ;;  %2733 = vmatprep.subr.bf16.mxu0 %v3066_v12  ;;  %v54_v37 = vld [vmem:[%s3499_s0 + $0x68] sm:$0xff]  ;;  %v3086_v40 = vld [vmem:[#allocation2 + $0x140] sm:$0xff]   ;;  %v3094_v48 = vld [vmem:[#allocation2 + $0x150] sm:$0xff]  }
  0x1f   :  { %2755 = vmatprep.subr.bf16.mxu1 %v3067_v13  ;;  %v2488_v38 = vcombine.low %v42_v34, %v54_v37  ;;  %v2489_v39 = vcombine.high %v42_v34, %v54_v37  ;;  %1760 = vmatprep.mubr.bf16.mxu0 %v2487_v36  ;;  %v3087_v41 = vld [vmem:[#allocation2 + $0x1c0] sm:$0xff]   ;;  %v3090_v44 = vld [vmem:[#allocation2 + $0x148] sm:$0xff]   ;;  %v3095_v49 = vld [vmem:[#allocation2 + $0x1d0] sm:$0xff]  }
  0x20   :  { %v3088_v42 = vld [vmem:[#allocation2 + $0x100] sm:$0xff]   ;;  %v3091_v45 = vld [vmem:[#allocation2 + $0x1c8] sm:$0xff]   ;;  %v3096_v50 = vld [vmem:[#allocation2 + $0x110] sm:$0xff]  }
  0x21   :  { %2734 = vmatpush3.bf16.msra.mxu0 %v3068_v14  ;;  %1801 = vmatprep.mubr.bf16.mxu1 %v2489_v39  ;;  %v3089_v43 = vld [vmem:[#allocation2 + $0x180] sm:$0xff]   ;;  %v3092_v46 = vld [vmem:[#allocation2 + $0x108] sm:$0xff]   ;;  %v3097_v51 = vld [vmem:[#allocation2 + $0x190] sm:$0xff]  }
  0x22   :  { %2756 = vmatpush3.bf16.msra.mxu1 %v3069_v15  ;;  %2735 = vmatprep.subr.bf16.mxu0 %v3070_v16  ;;  %v3093_v47 = vld [vmem:[#allocation2 + $0x188] sm:$0xff]   ;;  %v3098_v52 = vld [vmem:[#allocation2 + $0x158] sm:$0xff]   ;;  %v3102_v56 = vld [vmem:[#allocation2 + $0x160] sm:$0xff]  }
  0x23   :  { %2757 = vmatprep.subr.bf16.mxu1 %v3071_v17  ;;  %v3099_v53 = vld [vmem:[#allocation2 + $0x1d8] sm:$0xff]   ;;  %v3103_v57 = vld [vmem:[#allocation2 + $0x1e0] sm:$0xff]   ;;  %v3106_v60 = vld [vmem:[#allocation2 + $0x168] sm:$0xff]  }
  0x24   :  { %v3100_v54 = vld [vmem:[#allocation2 + $0x118] sm:$0xff]   ;;  %v3104_v58 = vld [vmem:[#allocation2 + $0x120] sm:$0xff]   ;;  %v3107_v61 = vld [vmem:[#allocation2 + $0x1e8] sm:$0xff]  }
  0x25   :  { %2736 = vmatpush3.bf16.msra.mxu0 %v3072_v18  ;;  %v3101_v55 = vld [vmem:[#allocation2 + $0x198] sm:$0xff]   ;;  %v3105_v59 = vld [vmem:[#allocation2 + $0x1a0] sm:$0xff]   ;;  %v3108_v62 = vld [vmem:[#allocation2 + $0x128] sm:$0xff]  }
  0x26   :  { %2758 = vmatpush3.bf16.msra.mxu1 %v3073_v19  ;;  %2737 = vmatprep.subr.bf16.mxu0 %v3074_v20  ;;  %v3109_v63 = vld [vmem:[#allocation2 + $0x1a8] sm:$0xff]   ;;  %v3110_v0 = vld [vmem:[#allocation2 + $0x170] sm:$0xff]   ;;  %v3114_v4 = vld [vmem:[#allocation2 + $0x178] sm:$0xff]  }
  0x27   :  { %2759 = vmatprep.subr.bf16.mxu1 %v3075_v21  ;;  %v3111_v1 = vld [vmem:[#allocation2 + $0x1f0] sm:$0xff]   ;;  %v3115_v5 = vld [vmem:[#allocation2 + $0x1f8] sm:$0xff]   ;;  %v3118_v16 = vld [vmem:[#allocation2 + $0x240] sm:$0xff]  }
  0x28   :  { %v3112_v2 = vld [vmem:[#allocation2 + $0x130] sm:$0xff]   ;;  %v3116_v6 = vld [vmem:[#allocation2 + $0x138] sm:$0xff]   ;;  %v3119_v17 = vld [vmem:[#allocation2 + $0x2c0] sm:$0xff]  }
  0x29   :  { %2738 = vmatpush3.bf16.msra.mxu0 %v3076_v22  ;;  %v3113_v3 = vld [vmem:[#allocation2 + $0x1b0] sm:$0xff]   ;;  %v3117_v7 = vld [vmem:[#allocation2 + $0x1b8] sm:$0xff]   ;;  %v3120_v18 = vld [vmem:[#allocation2 + $0x200] sm:$0xff]  }
  0x2a   :  { %2760 = vmatpush3.bf16.msra.mxu1 %v3077_v23  ;;  %2739 = vmatprep.subr.bf16.mxu0 %v3078_v24  ;;  %v43_v8 = vld [vmem:[%s3499_s0 + $0x10] sm:$0xff]  ;;  %v44_v12 = vld [vmem:[%s3499_s0 + $0x18] sm:$0xff]  ;;  %v3121_v19 = vld [vmem:[#allocation2 + $0x280] sm:$0xff]  }
  0x2b   :  { %2761 = vmatprep.subr.bf16.mxu1 %v3079_v25  ;;  %v55_v9 = vld [vmem:[%s3499_s0 + $0x70] sm:$0xff]  ;;  %v56_v13 = vld [vmem:[%s3499_s0 + $0x78] sm:$0xff]  ;;  %v3122_v20 = vld [vmem:[#allocation2 + $0x248] sm:$0xff]  }
  0x2c   :  { %v2490_v10 = vcombine.low %v43_v8, %v55_v9  ;;  %v2491_v11 = vcombine.high %v43_v8, %v55_v9  ;;  %v2492_v14 = vcombine.low %v44_v12, %v56_v13  ;;  %v2493_v15 = vcombine.high %v44_v12, %v56_v13  ;;  %v3123_v21 = vld [vmem:[#allocation2 + $0x2c8] sm:$0xff]   ;;  %v3126_v24 = vld [vmem:[#allocation2 + $0x250] sm:$0xff]   ;;  %v3134_v32 = vld [vmem:[#allocation2 + $0x260] sm:$0xff]  }
  0x2d   :  { %2740 = vmatpush3.bf16.msra.mxu0 %v3080_v26  ;;  %v3124_v22 = vld [vmem:[#allocation2 + $0x208] sm:$0xff]   ;;  %v3127_v25 = vld [vmem:[#allocation2 + $0x2d0] sm:$0xff]   ;;  %v3135_v33 = vld [vmem:[#allocation2 + $0x2e0] sm:$0xff]  }
  0x2e   :  { %2762 = vmatpush3.bf16.msra.mxu1 %v3081_v27  ;;  %2741 = vmatprep.subr.bf16.mxu0 %v3082_v28  ;;  %v3125_v23 = vld [vmem:[#allocation2 + $0x288] sm:$0xff]   ;;  %v3128_v26 = vld [vmem:[#allocation2 + $0x210] sm:$0xff]   ;;  %v3130_v28 = vld [vmem:[#allocation2 + $0x258] sm:$0xff]  }
  0x2f   :  { %2763 = vmatprep.subr.bf16.mxu1 %v3083_v29  ;;  %v3129_v27 = vld [vmem:[#allocation2 + $0x290] sm:$0xff]   ;;  %v3131_v29 = vld [vmem:[#allocation2 + $0x2d8] sm:$0xff]   ;;  %v3136_v34 = vld [vmem:[#allocation2 + $0x220] sm:$0xff]  }
  0x30   :  { %v3138_v36 = vld [vmem:[#allocation2 + $0x268] sm:$0xff]   ;;  %v3166_v8 = vld [vmem:[#allocation2 + $0x360] sm:$0xff]  }
  0x31   :  { %2742 = vmatpush3.bf16.msra.mxu0 %v3084_v30  ;;  %v3132_v30 = vld [vmem:[#allocation2 + $0x218] sm:$0xff]   ;;  %v3139_v37 = vld [vmem:[#allocation2 + $0x2e8] sm:$0xff]   ;;  %v3167_v9 = vld [vmem:[#allocation2 + $0x3e0] sm:$0xff]  }
  0x32   :  { %2764 = vmatpush3.bf16.msra.mxu1 %v3085_v31  ;;  %2771 = vmatprep.subr.bf16.mxu0 %v3086_v40  ;;  %v3133_v31 = vld [vmem:[#allocation2 + $0x298] sm:$0xff]   ;;  %v3141_v39 = vld [vmem:[#allocation2 + $0x2a8] sm:$0xff]   ;;  %v3142_v40 = vld [vmem:[#allocation2 + $0x270] sm:$0xff]  }
  0x33   :  { %2793 = vmatprep.subr.bf16.mxu1 %v3087_v41  ;;  %v3143_v41 = vld [vmem:[#allocation2 + $0x2f0] sm:$0xff]   ;;  %v3170_v12 = vld [vmem:[#allocation2 + $0x368] sm:$0xff]  }
  0x34   :  { %1761 = vmatmul.mubr.bf16.vlgmr.msra.gmra.mrb[0].mxu0 %v2486_v35  ;;  %v3137_v35 = vld [vmem:[#allocation2 + $0x2a0] sm:$0xff]   ;;  %v3171_v13 = vld [vmem:[#allocation2 + $0x3e8] sm:$0xff]  }
  0x35   :  { %1802 = vmatmul.mubr.bf16.vlgmr.msra.gmra.mrb[0].mxu1 %v2488_v38  ;;  %2772 = vmatpush3.bf16.msra.mxu0 %v3088_v42  ;;  %v3140_v38 = vld [vmem:[#allocation2 + $0x228] sm:$0xff]   ;;  %v3144_v42 = vld [vmem:[#allocation2 + $0x230] sm:$0xff]  }
  0x36   :  { %2794 = vmatpush3.bf16.msra.mxu1 %v3089_v43  ;;  %2773 = vmatprep.subr.bf16.mxu0 %v3090_v44  ;;  %v3145_v43 = vld [vmem:[#allocation2 + $0x2b0] sm:$0xff]   ;;  %v3146_v44 = vld [vmem:[#allocation2 + $0x278] sm:$0xff]  }
  0x37   :  { %2795 = vmatprep.subr.bf16.mxu1 %v3091_v45  ;;  %1842 = vmatprep.mubr.bf16.mxu0 %v2491_v11  ;;  %v3147_v45 = vld [vmem:[#allocation2 + $0x2f8] sm:$0xff]   ;;  %v3169_v11 = vld [vmem:[#allocation2 + $0x3a0] sm:$0xff]  }
  0x38   :  { %1883 = vmatprep.mubr.bf16.mxu1 %v2493_v15  ;;  %v3173_v15 = vld [vmem:[#allocation2 + $0x3a8] sm:$0xff]  }
  0x39   :  { %2774 = vmatpush3.bf16.msra.mxu0 %v3092_v46  ;;  %v3148_v46 = vld [vmem:[#allocation2 + $0x238] sm:$0xff]  }
  0x3a   :  { %2796 = vmatpush3.bf16.msra.mxu1 %v3093_v47  ;;  %2775 = vmatprep.subr.bf16.mxu0 %v3094_v48  ;;  %v3149_v47 = vld [vmem:[#allocation2 + $0x2b8] sm:$0xff]   ;;  %v45_v48 = vld [vmem:[%s3499_s0 + $0x20] sm:$0xff] }
  0x3b   :  { %2797 = vmatprep.subr.bf16.mxu1 %v3095_v49  ;;  %v57_v49 = vld [vmem:[%s3499_s0 + $0x80] sm:$0xff] }
  0x3d   :  { %2776 = vmatpush3.bf16.msra.mxu0 %v3096_v50  ;;  %v46_v50 = vld [vmem:[%s3499_s0 + $0x28] sm:$0xff] }
  0x3e   :  { %2798 = vmatpush3.bf16.msra.mxu1 %v3097_v51  ;;  %2777 = vmatprep.subr.bf16.mxu0 %v3098_v52  ;;  %v58_v51 = vld [vmem:[%s3499_s0 + $0x88] sm:$0xff]  ;;  %v2494_v52 = vcombine.low %v45_v48, %v57_v49 }
  0x3f   :  { %2799 = vmatprep.subr.bf16.mxu1 %v3099_v53  ;;  %v2495_v53 = vcombine.high %v45_v48, %v57_v49  ;;  %v3198_v48 = vld [vmem:[#allocation2 + $0x460] sm:$0xff]  }
  0x40   :  { %v3199_v49 = vld [vmem:[#allocation2 + $0x4e0] sm:$0xff]  }
  0x41   :  { %2778 = vmatpush3.bf16.msra.mxu0 %v3100_v54  ;;  %v2496_v54 = vcombine.low %v46_v50, %v58_v51 }
  0x42   :  { %2800 = vmatpush3.bf16.msra.mxu1 %v3101_v55  ;;  %2779 = vmatprep.subr.bf16.mxu0 %v3102_v56  ;;  %v2497_v55 = vcombine.high %v46_v50, %v58_v51  ;;  %v3150_v56 = vld [vmem:[#allocation2 + $0x340] sm:$0xff]  }
  0x43   :  { %2801 = vmatprep.subr.bf16.mxu1 %v3103_v57  ;;  %v3151_v57 = vld [vmem:[#allocation2 + $0x3c0] sm:$0xff]  }
  0x44   :  { %v3200_v50 = vld [vmem:[#allocation2 + $0x420] sm:$0xff]  }
  0x45   :  { %2780 = vmatpush3.bf16.msra.mxu0 %v3104_v58  ;;  %v3152_v58 = vld [vmem:[#allocation2 + $0x300] sm:$0xff]  }
  0x46   :  { %2802 = vmatpush3.bf16.msra.mxu1 %v3105_v59  ;;  %2781 = vmatprep.subr.bf16.mxu0 %v3106_v60  ;;  %v3153_v59 = vld [vmem:[#allocation2 + $0x380] sm:$0xff]   ;;  %v3154_v60 = vld [vmem:[#allocation2 + $0x348] sm:$0xff]  }
  0x47   :  { %2803 = vmatprep.subr.bf16.mxu1 %v3107_v61  ;;  %v3155_v61 = vld [vmem:[#allocation2 + $0x3c8] sm:$0xff]   ;;  %v3201_v51 = vld [vmem:[#allocation2 + $0x4a0] sm:$0xff]  }
  0x49   :  { %2782 = vmatpush3.bf16.msra.mxu0 %v3108_v62  ;;  %v3156_v62 = vld [vmem:[#allocation2 + $0x308] sm:$0xff]  }
  0x4a   :  { %2804 = vmatpush3.bf16.msra.mxu1 %v3109_v63  ;;  %2783 = vmatprep.subr.bf16.mxu0 %v3110_v0  ;;  %v3157_v63 = vld [vmem:[#allocation2 + $0x388] sm:$0xff]   ;;  %v3158_v0 = vld [vmem:[#allocation2 + $0x350] sm:$0xff]  }
  0x4b   :  { %2805 = vmatprep.subr.bf16.mxu1 %v3111_v1  ;;  %v3159_v1 = vld [vmem:[#allocation2 + $0x3d0] sm:$0xff]  }
  0x4d   :  { %2784 = vmatpush3.bf16.msra.mxu0 %v3112_v2  ;;  %v3160_v2 = vld [vmem:[#allocation2 + $0x310] sm:$0xff]  }
  0x4e   :  { %2806 = vmatpush3.bf16.msra.mxu1 %v3113_v3  ;;  %2785 = vmatprep.subr.bf16.mxu0 %v3114_v4  ;;  %v3161_v3 = vld [vmem:[#allocation2 + $0x390] sm:$0xff]   ;;  %v3162_v4 = vld [vmem:[#allocation2 + $0x358] sm:$0xff]  }
  0x4f   :  { %2807 = vmatprep.subr.bf16.mxu1 %v3115_v5  ;;  %v3163_v5 = vld [vmem:[#allocation2 + $0x3d8] sm:$0xff]  }
  0x51   :  { %2786 = vmatpush3.bf16.msra.mxu0 %v3116_v6  ;;  %v3164_v6 = vld [vmem:[#allocation2 + $0x318] sm:$0xff]  }
  0x52   :  { %2808 = vmatpush3.bf16.msra.mxu1 %v3117_v7  ;;  %2815 = vmatprep.subr.bf16.mxu0 %v3118_v16  ;;  %v3165_v7 = vld [vmem:[#allocation2 + $0x398] sm:$0xff]   ;;  %v3174_v16 = vld [vmem:[#allocation2 + $0x370] sm:$0xff]  }
  0x53   :  { %2837 = vmatprep.subr.bf16.mxu1 %v3119_v17  ;;  %v3175_v17 = vld [vmem:[#allocation2 + $0x3f0] sm:$0xff]  }
  0x54   :  { %1843 = vmatmul.mubr.bf16.vlgmr.msra.gmra.mrb[4].mxu0 %v2490_v10  ;;  %v3168_v10 = vld [vmem:[#allocation2 + $0x320] sm:$0xff]  }
  0x55   :  { %1884 = vmatmul.mubr.bf16.vlgmr.msra.gmra.mrb[4].mxu1 %v2492_v14  ;;  %2816 = vmatpush3.bf16.msra.mxu0 %v3120_v18  ;;  %v3172_v14 = vld [vmem:[#allocation2 + $0x328] sm:$0xff]   ;;  %v3176_v18 = vld [vmem:[#allocation2 + $0x330] sm:$0xff]  }
  0x56   :  { %2838 = vmatpush3.bf16.msra.mxu1 %v3121_v19  ;;  %2817 = vmatprep.subr.bf16.mxu0 %v3122_v20  ;;  %v3177_v19 = vld [vmem:[#allocation2 + $0x3b0] sm:$0xff]   ;;  %v3178_v20 = vld [vmem:[#allocation2 + $0x378] sm:$0xff]  }
  0x57   :  { %2839 = vmatprep.subr.bf16.mxu1 %v3123_v21  ;;  %1924 = vmatprep.mubr.bf16.mxu0 %v2495_v53  ;;  %v3179_v21 = vld [vmem:[#allocation2 + $0x3f8] sm:$0xff]   ;;  %v3203_v53 = vld [vmem:[#allocation2 + $0x4e8] sm:$0xff]  }
  0x58   :  { %1965 = vmatprep.mubr.bf16.mxu1 %v2497_v55  ;;  %v3205_v55 = vld [vmem:[#allocation2 + $0x4a8] sm:$0xff]  }
  0x59   :  { %2818 = vmatpush3.bf16.msra.mxu0 %v3124_v22  ;;  %v3180_v22 = vld [vmem:[#allocation2 + $0x338] sm:$0xff]  }
  0x5a   :  { %2840 = vmatpush3.bf16.msra.mxu1 %v3125_v23  ;;  %2819 = vmatprep.subr.bf16.mxu0 %v3126_v24  ;;  %v3181_v23 = vld [vmem:[#allocation2 + $0x3b8] sm:$0xff]   ;;  %v47_v24 = vld [vmem:[%s3499_s0 + $0x30] sm:$0xff] }
  0x5b   :  { %2841 = vmatprep.subr.bf16.mxu1 %v3127_v25  ;;  %v59_v25 = vld [vmem:[%s3499_s0 + $0x90] sm:$0xff] }
  0x5d   :  { %2820 = vmatpush3.bf16.msra.mxu0 %v3128_v26  ;;  %v48_v26 = vld [vmem:[%s3499_s0 + $0x38] sm:$0xff] }
  0x5e   :  { %2842 = vmatpush3.bf16.msra.mxu1 %v3129_v27  ;;  %2821 = vmatprep.subr.bf16.mxu0 %v3130_v28  ;;  %v2498_v27 = vcombine.low %v47_v24, %v59_v25  ;;  %v2499_v28 = vcombine.high %v47_v24, %v59_v25  ;;  %v3230_v24 = vld [vmem:[#allocation2 + $0x560] sm:$0xff]  }
  0x5f   :  { %2843 = vmatprep.subr.bf16.mxu1 %v3131_v29  ;;  %v60_v29 = vld [vmem:[%s3499_s0 + $0x98] sm:$0xff]  ;;  %v3231_v25 = vld [vmem:[#allocation2 + $0x5e0] sm:$0xff]  }
  0x61   :  { %2822 = vmatpush3.bf16.msra.mxu0 %v3132_v30  ;;  %v2500_v30 = vcombine.low %v48_v26, %v60_v29 }
  0x62   :  { %2844 = vmatpush3.bf16.msra.mxu1 %v3133_v31  ;;  %2823 = vmatprep.subr.bf16.mxu0 %v3134_v32  ;;  %v2501_v31 = vcombine.high %v48_v26, %v60_v29  ;;  %v3182_v32 = vld [vmem:[#allocation2 + $0x440] sm:$0xff]   ;;  %v3235_v29 = vld [vmem:[#allocation2 + $0x5e8] sm:$0xff]  }
  0x63   :  { %2845 = vmatprep.subr.bf16.mxu1 %v3135_v33  ;;  %v3183_v33 = vld [vmem:[#allocation2 + $0x4c0] sm:$0xff]  }
  0x64   :  { %v3232_v26 = vld [vmem:[#allocation2 + $0x520] sm:$0xff]  }
  0x65   :  { %2824 = vmatpush3.bf16.msra.mxu0 %v3136_v34  ;;  %v3184_v34 = vld [vmem:[#allocation2 + $0x400] sm:$0xff]  }
  0x66   :  { %2846 = vmatpush3.bf16.msra.mxu1 %v3137_v35  ;;  %2825 = vmatprep.subr.bf16.mxu0 %v3138_v36  ;;  %v3185_v35 = vld [vmem:[#allocation2 + $0x480] sm:$0xff]   ;;  %v3186_v36 = vld [vmem:[#allocation2 + $0x448] sm:$0xff]  }
  0x67   :  { %2847 = vmatprep.subr.bf16.mxu1 %v3139_v37  ;;  %v3187_v37 = vld [vmem:[#allocation2 + $0x4c8] sm:$0xff]  }
  0x69   :  { %2826 = vmatpush3.bf16.msra.mxu0 %v3140_v38  ;;  %v3188_v38 = vld [vmem:[#allocation2 + $0x408] sm:$0xff]  }
  0x6a   :  { %2848 = vmatpush3.bf16.msra.mxu1 %v3141_v39  ;;  %2827 = vmatprep.subr.bf16.mxu0 %v3142_v40  ;;  %v3189_v39 = vld [vmem:[#allocation2 + $0x488] sm:$0xff]   ;;  %v3190_v40 = vld [vmem:[#allocation2 + $0x450] sm:$0xff]  }
  0x6b   :  { %2849 = vmatprep.subr.bf16.mxu1 %v3143_v41  ;;  %v3191_v41 = vld [vmem:[#allocation2 + $0x4d0] sm:$0xff]  }
  0x6d   :  { %2828 = vmatpush3.bf16.msra.mxu0 %v3144_v42  ;;  %v3192_v42 = vld [vmem:[#allocation2 + $0x410] sm:$0xff]  }
  0x6e   :  { %2850 = vmatpush3.bf16.msra.mxu1 %v3145_v43  ;;  %2829 = vmatprep.subr.bf16.mxu0 %v3146_v44  ;;  %v3193_v43 = vld [vmem:[#allocation2 + $0x490] sm:$0xff]   ;;  %v3194_v44 = vld [vmem:[#allocation2 + $0x458] sm:$0xff]  }
  0x6f   :  { %2851 = vmatprep.subr.bf16.mxu1 %v3147_v45  ;;  %v3195_v45 = vld [vmem:[#allocation2 + $0x4d8] sm:$0xff]  }
  0x71   :  { %2830 = vmatpush3.bf16.msra.mxu0 %v3148_v46  ;;  %v3196_v46 = vld [vmem:[#allocation2 + $0x418] sm:$0xff]  }
  0x72   :  { %2852 = vmatpush3.bf16.msra.mxu1 %v3149_v47  ;;  %2859 = vmatprep.subr.bf16.mxu0 %v3150_v56  ;;  %v3197_v47 = vld [vmem:[#allocation2 + $0x498] sm:$0xff]   ;;  %v3206_v56 = vld [vmem:[#allocation2 + $0x470] sm:$0xff]  }
  0x73   :  { %2881 = vmatprep.subr.bf16.mxu1 %v3151_v57  ;;  %v3207_v57 = vld [vmem:[#allocation2 + $0x4f0] sm:$0xff]  }
  0x74   :  { %1925 = vmatmul.mubr.bf16.vlgmr.msra.gmra.mrb[8].mxu0 %v2494_v52  ;;  %v3202_v52 = vld [vmem:[#allocation2 + $0x468] sm:$0xff]  }
  0x75   :  { %1966 = vmatmul.mubr.bf16.vlgmr.msra.gmra.mrb[8].mxu1 %v2496_v54  ;;  %2860 = vmatpush3.bf16.msra.mxu0 %v3152_v58  ;;  %v3204_v54 = vld [vmem:[#allocation2 + $0x428] sm:$0xff]   ;;  %v3208_v58 = vld [vmem:[#allocation2 + $0x430] sm:$0xff]  }
  0x76   :  { %2882 = vmatpush3.bf16.msra.mxu1 %v3153_v59  ;;  %2861 = vmatprep.subr.bf16.mxu0 %v3154_v60  ;;  %v3209_v59 = vld [vmem:[#allocation2 + $0x4b0] sm:$0xff]   ;;  %v3210_v60 = vld [vmem:[#allocation2 + $0x478] sm:$0xff]  }
  0x77   :  { %2883 = vmatprep.subr.bf16.mxu1 %v3155_v61  ;;  %2006 = vmatprep.mubr.bf16.mxu0 %v2499_v28  ;;  %v3211_v61 = vld [vmem:[#allocation2 + $0x4f8] sm:$0xff]   ;;  %v3234_v28 = vld [vmem:[#allocation2 + $0x568] sm:$0xff]  }
  0x78   :  { %2047 = vmatprep.mubr.bf16.mxu1 %v2501_v31  ;;  %v3237_v31 = vld [vmem:[#allocation2 + $0x5a8] sm:$0xff]  }
  0x79   :  { %2862 = vmatpush3.bf16.msra.mxu0 %v3156_v62  ;;  %v3212_v62 = vld [vmem:[#allocation2 + $0x438] sm:$0xff]  }
  0x7a   :  { %2884 = vmatpush3.bf16.msra.mxu1 %v3157_v63  ;;  %2863 = vmatprep.subr.bf16.mxu0 %v3158_v0  ;;  %v3213_v63 = vld [vmem:[#allocation2 + $0x4b8] sm:$0xff]   ;;  %v49_v0 = vld [vmem:[%s3499_s0 + $0x40] sm:$0xff] }
  0x7b   :  { %2885 = vmatprep.subr.bf16.mxu1 %v3159_v1  ;;  %v61_v1 = vld [vmem:[%s3499_s0 + $0xa0] sm:$0xff] }
  0x7d   :  { %2864 = vmatpush3.bf16.msra.mxu0 %v3160_v2  ;;  %v2502_v2 = vcombine.low %v49_v0, %v61_v1 }
  0x7e   :  { %2886 = vmatpush3.bf16.msra.mxu1 %v3161_v3  ;;  %2865 = vmatprep.subr.bf16.mxu0 %v3162_v4  ;;  %v2503_v3 = vcombine.high %v49_v0, %v61_v1  ;;  %v50_v4 = vld [vmem:[%s3499_s0 + $0x48] sm:$0xff]  ;;  %v3246_v1 = vld [vmem:[%s3502_s3] sm:$0xff]  }
  0x7f   :  { %2887 = vmatprep.subr.bf16.mxu1 %v3163_v5  ;;  %v62_v5 = vld [vmem:[%s3499_s0 + $0xa8] sm:$0xff] }
  0x81   :  { %2866 = vmatpush3.bf16.msra.mxu0 %v3164_v6  ;;  %v2504_v6 = vcombine.low %v50_v4, %v62_v5 }
  0x82   :  { %2888 = vmatpush3.bf16.msra.mxu1 %v3165_v7  ;;  %2867 = vmatprep.subr.bf16.mxu0 %v3166_v8  ;;  %v2505_v7 = vcombine.high %v50_v4, %v62_v5  ;;  %v3214_v8 = vld [vmem:[#allocation2 + $0x540] sm:$0xff]   ;;  %v3248_v4 = vld [vmem:[%s3502_s3 + $0x10] sm:$0xff]   ;;  %v3249_v5 = vld [vmem:[%s3502_s3 + $0x18] sm:$0xff]  }
  0x83   :  { %2889 = vmatprep.subr.bf16.mxu1 %v3167_v9  ;;  %v3215_v9 = vld [vmem:[#allocation2 + $0x5c0] sm:$0xff]  }
  0x85   :  { %2868 = vmatpush3.bf16.msra.mxu0 %v3168_v10  ;;  %v3216_v10 = vld [vmem:[#allocation2 + $0x500] sm:$0xff]  }
  0x86   :  { %2890 = vmatpush3.bf16.msra.mxu1 %v3169_v11  ;;  %2869 = vmatprep.subr.bf16.mxu0 %v3170_v12  ;;  %v3217_v11 = vld [vmem:[#allocation2 + $0x580] sm:$0xff]   ;;  %v3218_v12 = vld [vmem:[#allocation2 + $0x548] sm:$0xff]  }
  0x87   :  { %2891 = vmatprep.subr.bf16.mxu1 %v3171_v13  ;;  %v3219_v13 = vld [vmem:[#allocation2 + $0x5c8] sm:$0xff]  }
  0x89   :  { %2870 = vmatpush3.bf16.msra.mxu0 %v3172_v14  ;;  %v3220_v14 = vld [vmem:[#allocation2 + $0x508] sm:$0xff]  }
  0x8a   :  { %2892 = vmatpush3.bf16.msra.mxu1 %v3173_v15  ;;  %2871 = vmatprep.subr.bf16.mxu0 %v3174_v16  ;;  %v3221_v15 = vld [vmem:[#allocation2 + $0x588] sm:$0xff]   ;;  %v3222_v16 = vld [vmem:[#allocation2 + $0x550] sm:$0xff]  }
  0x8b   :  { %2893 = vmatprep.subr.bf16.mxu1 %v3175_v17  ;;  %v3223_v17 = vld [vmem:[#allocation2 + $0x5d0] sm:$0xff]  }
  0x8d   :  { %2872 = vmatpush3.bf16.msra.mxu0 %v3176_v18  ;;  %v3224_v18 = vld [vmem:[#allocation2 + $0x510] sm:$0xff]  }
  0x8e   :  { %2894 = vmatpush3.bf16.msra.mxu1 %v3177_v19  ;;  %2873 = vmatprep.subr.bf16.mxu0 %v3178_v20  ;;  %v3225_v19 = vld [vmem:[#allocation2 + $0x590] sm:$0xff]   ;;  %v3226_v20 = vld [vmem:[#allocation2 + $0x558] sm:$0xff]  }
  0x8f   :  { %2895 = vmatprep.subr.bf16.mxu1 %v3179_v21  ;;  %v3227_v21 = vld [vmem:[#allocation2 + $0x5d8] sm:$0xff]  }
  0x91   :  { %2874 = vmatpush3.bf16.msra.mxu0 %v3180_v22  ;;  %v3228_v22 = vld [vmem:[#allocation2 + $0x518] sm:$0xff]  }
  0x92   :  { %2896 = vmatpush3.bf16.msra.mxu1 %v3181_v23  ;;  %2903 = vmatprep.subr.bf16.mxu0 %v3182_v32  ;;  %v3229_v23 = vld [vmem:[#allocation2 + $0x598] sm:$0xff]   ;;  %v3238_v32 = vld [vmem:[#allocation2 + $0x570] sm:$0xff]  }
  0x93   :  { %2925 = vmatprep.subr.bf16.mxu1 %v3183_v33  ;;  %v3239_v33 = vld [vmem:[#allocation2 + $0x5f0] sm:$0xff]  }
  0x94   :  { %2007 = vmatmul.mubr.bf16.vlgmr.msra.gmra.mrb[12].mxu0 %v2498_v27  ;;  %v3233_v27 = vld [vmem:[#allocation2 + $0x5a0] sm:$0xff]  }
  0x95   :  { %2048 = vmatmul.mubr.bf16.vlgmr.msra.gmra.mrb[12].mxu1 %v2500_v30  ;;  %2904 = vmatpush3.bf16.msra.mxu0 %v3184_v34  ;;  %v3236_v30 = vld [vmem:[#allocation2 + $0x528] sm:$0xff]   ;;  %v3240_v34 = vld [vmem:[#allocation2 + $0x530] sm:$0xff]  }
  0x96   :  { %2926 = vmatpush3.bf16.msra.mxu1 %v3185_v35  ;;  %2905 = vmatprep.subr.bf16.mxu0 %v3186_v36  ;;  %v3241_v35 = vld [vmem:[#allocation2 + $0x5b0] sm:$0xff]   ;;  %v3242_v36 = vld [vmem:[#allocation2 + $0x578] sm:$0xff]  }
  0x97   :  { %2927 = vmatprep.subr.bf16.mxu1 %v3187_v37  ;;  %2088 = vmatprep.mubr.bf16.mxu0 %v2503_v3  ;;  %v3243_v37 = vld [vmem:[#allocation2 + $0x5f8] sm:$0xff]   ;;  %v3247_v3 = vld [vmem:[%s3502_s3 + $0x8] sm:$0xff]  }
  0x98   :  { %2129 = vmatprep.mubr.bf16.mxu1 %v2505_v7 }
  0x99   :  { %2906 = vmatpush3.bf16.msra.mxu0 %v3188_v38  ;;  %v3244_v38 = vld [vmem:[#allocation2 + $0x538] sm:$0xff]  }
  0x9a   :  { %2928 = vmatpush3.bf16.msra.mxu1 %v3189_v39  ;;  %2907 = vmatprep.subr.bf16.mxu0 %v3190_v40  ;;  %v3245_v39 = vld [vmem:[#allocation2 + $0x5b8] sm:$0xff]   ;;  %v51_v40 = vld [vmem:[%s3499_s0 + $0x50] sm:$0xff] }
  0x9b   :  { %2929 = vmatprep.subr.bf16.mxu1 %v3191_v41  ;;  %v63_v41 = vld [vmem:[%s3499_s0 + $0xb0] sm:$0xff] }
  0x9d   :  { %2908 = vmatpush3.bf16.msra.mxu0 %v3192_v42  ;;  %v52_v42 = vld [vmem:[%s3499_s0 + $0x58] sm:$0xff] }
  0x9e   :  { %2930 = vmatpush3.bf16.msra.mxu1 %v3193_v43  ;;  %2909 = vmatprep.subr.bf16.mxu0 %v3194_v44  ;;  %v64_v43 = vld [vmem:[%s3499_s0 + $0xb8] sm:$0xff]  ;;  %v2506_v44 = vcombine.low %v51_v40, %v63_v41 }
  0x9f   :  { %2931 = vmatprep.subr.bf16.mxu1 %v3195_v45  ;;  %v2507_v45 = vcombine.high %v51_v40, %v63_v41  ;;  %v3258_v40 = vld [vmem:[%s3504_s5 + $0x20] sm:$0xff]  }
  0xa1   :  { %2910 = vmatpush3.bf16.msra.mxu0 %v3196_v46  ;;  %v2508_v46 = vcombine.low %v52_v42, %v64_v43 }
  0xa2   :  { %2932 = vmatpush3.bf16.msra.mxu1 %v3197_v47  ;;  %2911 = vmatprep.subr.bf16.mxu0 %v3198_v48  ;;  %v2509_v47 = vcombine.high %v52_v42, %v64_v43 }
  0xa3   :  { %2933 = vmatprep.subr.bf16.mxu1 %v3199_v49 }
  0xa5   :  { %2912 = vmatpush3.bf16.msra.mxu0 %v3200_v50  ;;  %v2485_v50 = vld [vmem:[%s3501_s2] ss:$0 sm:$0xff] }
  0xa6   :  { %2934 = vmatpush3.bf16.msra.mxu1 %v3201_v51  ;;  %2913 = vmatprep.subr.bf16.mxu0 %v3202_v52 }
  0xa7   :  { %2935 = vmatprep.subr.bf16.mxu1 %v3203_v53 }
  0xa9   :  { %2914 = vmatpush3.bf16.msra.mxu0 %v3204_v54 }
  0xaa   :  { %2936 = vmatpush3.bf16.msra.mxu1 %v3205_v55  ;;  %2915 = vmatprep.subr.bf16.mxu0 %v3206_v56 }
  0xab   :  { %2937 = vmatprep.subr.bf16.mxu1 %v3207_v57 }
  0xad   :  { %2916 = vmatpush3.bf16.msra.mxu0 %v3208_v58 }
  0xae   :  { %2938 = vmatpush3.bf16.msra.mxu1 %v3209_v59  ;;  %2917 = vmatprep.subr.bf16.mxu0 %v3210_v60 }
  0xaf   :  { %2939 = vmatprep.subr.bf16.mxu1 %v3211_v61 }
  0xb1   :  { %2918 = vmatpush3.bf16.msra.mxu0 %v3212_v62 }
  0xb2   :  { %2940 = vmatpush3.bf16.msra.mxu1 %v3213_v63  ;;  %2947 = vmatprep.subr.bf16.mxu0 %v3214_v8 }
  0xb3   :  { %2969 = vmatprep.subr.bf16.mxu1 %v3215_v9 }
  0xb4   :  { %2089 = vmatmul.mubr.bf16.vlgmr.msra.gmra.mrb[16].mxu0 %v2502_v2  ;;  %v3289_v2 = vmov 0.0  }
  0xb5   :  { %2130 = vmatmul.mubr.bf16.vlgmr.msra.gmra.mrb[16].mxu1 %v2504_v6  ;;  %2948 = vmatpush3.bf16.msra.mxu0 %v3216_v10 }
  0xb6   :  { %2970 = vmatpush3.bf16.msra.mxu1 %v3217_v11  ;;  %2949 = vmatprep.subr.bf16.mxu0 %v3218_v12 }
  0xb7   :  { %2971 = vmatprep.subr.bf16.mxu1 %v3219_v13  ;;  %2170 = vmatprep.mubr.bf16.mxu0 %v2507_v45 }
  0xb8   :  { %2211 = vmatprep.mubr.bf16.mxu1 %v2509_v47 }
  0xb9   :  { %2950 = vmatpush3.bf16.msra.mxu0 %v3220_v14 }
  0xba   :  { %2972 = vmatpush3.bf16.msra.mxu1 %v3221_v15  ;;  %2951 = vmatprep.subr.bf16.mxu0 %v3222_v16 }
  0xbb   :  { %2973 = vmatprep.subr.bf16.mxu1 %v3223_v17 }
  0xbd   :  { %2952 = vmatpush3.bf16.msra.mxu0 %v3224_v18 }
  0xbe   :  { %2974 = vmatpush3.bf16.msra.mxu1 %v3225_v19  ;;  %2953 = vmatprep.subr.bf16.mxu0 %v3226_v20 }
  0xbf   :  { %2975 = vmatprep.subr.bf16.mxu1 %v3227_v21  ;;  %v3250_v21 = vld [vmem:[%s3502_s3 + $0x20] sm:$0xff]  }
  0xc1   :  { %2954 = vmatpush3.bf16.msra.mxu0 %v3228_v22 }
  0xc2   :  { %2976 = vmatpush3.bf16.msra.mxu1 %v3229_v23  ;;  %2955 = vmatprep.subr.bf16.mxu0 %v3230_v24  ;;  %v3251_v23 = vld [vmem:[%s3502_s3 + $0x28] sm:$0xff]   ;;  %v3252_v24 = vld [vmem:[%s3502_s3 + $0x30] sm:$0xff]  }
  0xc3   :  { %2977 = vmatprep.subr.bf16.mxu1 %v3231_v25  ;;  %v3253_v25 = vld [vmem:[%s3502_s3 + $0x38] sm:$0xff]  }
  0xc5   :  { %2956 = vmatpush3.bf16.msra.mxu0 %v3232_v26  ;;  %v3254_v26 = vld [vmem:[%s3504_s5] sm:$0xff]  }
  0xc6   :  { %2978 = vmatpush3.bf16.msra.mxu1 %v3233_v27  ;;  %2957 = vmatprep.subr.bf16.mxu0 %v3234_v28  ;;  %v3255_v27 = vld [vmem:[%s3504_s5 + $0x8] sm:$0xff]   ;;  %v3256_v28 = vld [vmem:[%s3504_s5 + $0x10] sm:$0xff]  }
  0xc7   :  { %2979 = vmatprep.subr.bf16.mxu1 %v3235_v29  ;;  %v3257_v29 = vld [vmem:[%s3504_s5 + $0x18] sm:$0xff]  }
  0xc9   :  { %2958 = vmatpush3.bf16.msra.mxu0 %v3236_v30 }
  0xca   :  { %2980 = vmatpush3.bf16.msra.mxu1 %v3237_v31  ;;  %2959 = vmatprep.subr.bf16.mxu0 %v3238_v32 }
  0xcb   :  { %2981 = vmatprep.subr.bf16.mxu1 %v3239_v33 }
  0xcd   :  { %2960 = vmatpush3.bf16.msra.mxu0 %v3240_v34 }
  0xce   :  { %2982 = vmatpush3.bf16.msra.mxu1 %v3241_v35  ;;  %2961 = vmatprep.subr.bf16.mxu0 %v3242_v36 }
  0xcf   :  { %2983 = vmatprep.subr.bf16.mxu1 %v3243_v37 }
  0xd1   :  { %2962 = vmatpush3.bf16.msra.mxu0 %v3244_v38 }
  0xd2   :  { %2984 = vmatpush3.bf16.msra.mxu1 %v3245_v39  ;;  %3009 = vmatprep.subr.bf16.mxu0 %v3289_v2 }
  0xd3   :  { %3029 = vmatprep.subr.bf16.mxu1 %v3289_v2 }
  0xd4   :  { %2171 = vmatmul.mubr.bf16.vlgmr.msra.gmra.mrb[20].mxu0 %v2506_v44 }
  0xd5   :  { %2212 = vmatmul.mubr.bf16.vlgmr.msra.gmra.mrb[20].mxu1 %v2508_v46  ;;  %3010 = vmatpush3.bf16.msra.mxu0 %v3246_v1 }
  0xd6   :  { %3011 = vmatprep.subr.bf16.mxu0 %v3289_v2  ;;  %3025 = vmatprep.mubr.msk.bf16.mxu0 %vm3290_vm0, %v3289_v2 }
  0xd7   :  { %3045 = vmatprep.mubr.msk.bf16.mxu1 %vm3290_vm0, %v3289_v2  ;;  %3030 = vmatpush3.bf16.msra.mxu1 %v3254_v26 }
  0xd8   :  { %3031 = vmatprep.subr.bf16.mxu1 %v3289_v2 }
  0xd9   :  { %3012 = vmatpush3.bf16.msra.mxu0 %v3247_v3 }
  0xda   :  { %3013 = vmatprep.subr.bf16.mxu0 %v3289_v2 }
  0xdb   :  { %3032 = vmatpush3.bf16.msra.mxu1 %v3255_v27 }
  0xdc   :  { %3033 = vmatprep.subr.bf16.mxu1 %v3289_v2 }
  0xdd   :  { %3014 = vmatpush3.bf16.msra.mxu0 %v3248_v4 }
  0xde   :  { %3015 = vmatprep.subr.bf16.mxu0 %v3289_v2 }
  0xdf   :  { %3034 = vmatpush3.bf16.msra.mxu1 %v3256_v28 }
  0xe0   :  { %3035 = vmatprep.subr.bf16.mxu1 %v3289_v2 }
  0xe1   :  { %3016 = vmatpush3.bf16.msra.mxu0 %v3249_v5 }
  0xe2   :  { %3017 = vmatprep.subr.bf16.mxu0 %v3289_v2 }
  0xe3   :  { %3036 = vmatpush3.bf16.msra.mxu1 %v3257_v29 }
  0xe4   :  { %3037 = vmatprep.subr.bf16.mxu1 %v3289_v2 }
  0xe5   :  { %3018 = vmatpush3.bf16.msra.mxu0 %v3250_v21 }
  0xe6   :  { %3019 = vmatprep.subr.bf16.mxu0 %v3289_v2 }
  0xe7   :  { %3038 = vmatpush3.bf16.msra.mxu1 %v3258_v40  ;;  %v3260_v40 = vld [vmem:[%s3504_s5 + $0x30] sm:$0xff]  }
  0xe8   :  { %3039 = vmatprep.subr.bf16.mxu1 %v3289_v2 }
  0xe9   :  { %3020 = vmatpush3.bf16.msra.mxu0 %v3251_v23 }
  0xea   :  { %3021 = vmatprep.subr.bf16.mxu0 %v3289_v2 }
  0xed   :  { %3022 = vmatpush3.bf16.msra.mxu0 %v3252_v24 }
  0xee   :  { %3023 = vmatprep.subr.bf16.mxu0 %v3289_v2 }
  0xf1   :  { %3024 = vmatpush3.bf16.msra.mxu0 %v3253_v25 }
 0x107   :  { %v2743_v48 = vpop.f32.mrb[0].mxu0 }
 0x108   :  { %v2765_v49 = vpop.f32.mrb[0].mxu1  ;;  %v2744_v51 = vpop.f32.mrb[1].mxu0 }
 0x109   :  { %v2745_v52 = vadd.f32 %v2744_v51, %v2743_v48  ;;  %v2766_v53 = vpop.f32.mrb[1].mxu1  ;;  %v2746_v54 = vpop.f32.mrb[2].mxu0 }
 0x10a   :  { %v2767_v55 = vadd.f32 %v2766_v53, %v2765_v49  ;;  %v2768_v56 = vpop.f32.mrb[2].mxu1  ;;  %v2747_v57 = vpop.f32.mrb[3].mxu0 }
 0x10b   :  { %v1763_v58 = vadd.f32 %v2745_v52, %v2485_v50  ;;  %v2748_v59 = vadd.f32 %v2747_v57, %v2746_v54  ;;  %v2769_v60 = vpop.f32.mrb[3].mxu1 }
 0x10c   :  { %v2770_v61 = vadd.f32 %v2769_v60, %v2768_v56 }
 0x10d   :  { %v1804_v62 = vadd.f32 %v2767_v55, %v1763_v58  ;;  %v1766_v63 = vadd.f32 %v2748_v59, %v2485_v50 }
 0x10f   :  { %v1807_v0 = vadd.f32 %v2770_v61, %v1766_v63 }
 0x127   :  { %v2787_v6 = vpop.f32.mrb[4].mxu0 }
 0x128   :  { %v2809_v7 = vpop.f32.mrb[4].mxu1  ;;  %v2788_v8 = vpop.f32.mrb[5].mxu0 }
 0x129   :  { %v2789_v9 = vadd.f32 %v2788_v8, %v2787_v6  ;;  %v2810_v10 = vpop.f32.mrb[5].mxu1  ;;  %v2790_v11 = vpop.f32.mrb[6].mxu0 }
 0x12a   :  { %v2811_v12 = vadd.f32 %v2810_v10, %v2809_v7  ;;  %v2812_v13 = vpop.f32.mrb[6].mxu1  ;;  %v2791_v14 = vpop.f32.mrb[7].mxu0 }
 0x12b   :  { %v1845_v15 = vadd.f32 %v2789_v9, %v1804_v62  ;;  %v2792_v16 = vadd.f32 %v2791_v14, %v2790_v11  ;;  %v2813_v17 = vpop.f32.mrb[7].mxu1 }
 0x12c   :  { %v2814_v18 = vadd.f32 %v2813_v17, %v2812_v13 }
 0x12d   :  { %v1886_v19 = vadd.f32 %v2811_v12, %v1845_v15  ;;  %v1848_v20 = vadd.f32 %v2792_v16, %v1807_v0 }
 0x12f   :  { %v1889_v22 = vadd.f32 %v2814_v18, %v1848_v20 }
 0x147   :  { %v2831_v30 = vpop.f32.mrb[8].mxu0 }
 0x148   :  { %v2853_v31 = vpop.f32.mrb[8].mxu1  ;;  %v2832_v32 = vpop.f32.mrb[9].mxu0 }
 0x149   :  { %v2854_v33 = vpop.f32.mrb[9].mxu1  ;;  %v2833_v34 = vadd.f32 %v2832_v32, %v2831_v30  ;;  %v2834_v36 = vpop.f32.mrb[10].mxu0 }
 0x14a   :  { %v2855_v35 = vadd.f32 %v2854_v33, %v2853_v31  ;;  %v2856_v37 = vpop.f32.mrb[10].mxu1  ;;  %v2835_v38 = vpop.f32.mrb[11].mxu0 }
 0x14b   :  { %v2857_v39 = vpop.f32.mrb[11].mxu1  ;;  %v1927_v41 = vadd.f32 %v2833_v34, %v1886_v19  ;;  %v2836_v42 = vadd.f32 %v2835_v38, %v2834_v36 }
 0x14c   :  { %v2858_v43 = vadd.f32 %v2857_v39, %v2856_v37  ;;  %v3259_v39 = vld [vmem:[%s3504_s5 + $0x28] sm:$0xff]  }
 0x14d   :  { %v1968_v44 = vadd.f32 %v2855_v35, %v1927_v41  ;;  %v1930_v45 = vadd.f32 %v2836_v42, %v1889_v22  ;;  %3040 = vmatpush3.bf16.msra.mxu1 %v3259_v39  ;;  %v3261_v41 = vld [vmem:[%s3504_s5 + $0x38] sm:$0xff]   ;;  %v2702_v42 = vld [vmem:[%s3503_s4] ss:$0 sm:$0xff] }
 0x14e   :  { %3041 = vmatprep.subr.bf16.mxu1 %v3289_v2 }
 0x14f   :  { %v1971_v46 = vadd.f32 %v2858_v43, %v1930_v45 }
 0x151   :  { %3042 = vmatpush3.bf16.msra.mxu1 %v3260_v40 }
 0x152   :  { %3043 = vmatprep.subr.bf16.mxu1 %v3289_v2 }
 0x155   :  { %3044 = vmatpush3.bf16.msra.mxu1 %v3261_v41 }
 0x167   :  { %v2875_v47 = vpop.f32.mrb[12].mxu0 }
 0x168   :  { %v2897_v48 = vpop.f32.mrb[12].mxu1  ;;  %v2876_v49 = vpop.f32.mrb[13].mxu0 }
 0x169   :  { %v2877_v50 = vadd.f32 %v2876_v49, %v2875_v47  ;;  %v2898_v51 = vpop.f32.mrb[13].mxu1  ;;  %v2878_v52 = vpop.f32.mrb[14].mxu0 }
 0x16a   :  { %v2899_v53 = vadd.f32 %v2898_v51, %v2897_v48  ;;  %v2900_v54 = vpop.f32.mrb[14].mxu1  ;;  %v2879_v55 = vpop.f32.mrb[15].mxu0 }
 0x16b   :  { %v2009_v56 = vadd.f32 %v2877_v50, %v1968_v44  ;;  %v2880_v57 = vadd.f32 %v2879_v55, %v2878_v52  ;;  %v2901_v58 = vpop.f32.mrb[15].mxu1 }
 0x16c   :  { %v2902_v59 = vadd.f32 %v2901_v58, %v2900_v54 }
 0x16d   :  { %v2050_v60 = vadd.f32 %v2899_v53, %v2009_v56  ;;  %v2012_v61 = vadd.f32 %v2880_v57, %v1971_v46  ;;  %v2711_v56 = vld [vmem:[%s3505_s6] ss:$0 sm:$0xff] }
 0x16f   :  { %v2053_v62 = vadd.f32 %v2902_v59, %v2012_v61 }
 0x187   :  { %v2919_v63 = vpop.f32.mrb[16].mxu0 }
 0x188   :  { %v2941_v0 = vpop.f32.mrb[16].mxu1  ;;  %v2920_v1 = vpop.f32.mrb[17].mxu0 }
 0x189   :  { %v2921_v3 = vadd.f32 %v2920_v1, %v2919_v63  ;;  %v2942_v4 = vpop.f32.mrb[17].mxu1  ;;  %v2922_v5 = vpop.f32.mrb[18].mxu0 }
 0x18a   :  { %v2943_v6 = vadd.f32 %v2942_v4, %v2941_v0  ;;  %v2944_v7 = vpop.f32.mrb[18].mxu1  ;;  %v2923_v8 = vpop.f32.mrb[19].mxu0 }
 0x18b   :  { %v2091_v9 = vadd.f32 %v2921_v3, %v2050_v60  ;;  %v2924_v10 = vadd.f32 %v2923_v8, %v2922_v5  ;;  %v2945_v11 = vpop.f32.mrb[19].mxu1 }
 0x18c   :  { %v2946_v12 = vadd.f32 %v2945_v11, %v2944_v7 }
 0x18d   :  { %v2132_v13 = vadd.f32 %v2943_v6, %v2091_v9  ;;  %v2094_v14 = vadd.f32 %v2924_v10, %v2053_v62 }
 0x18f   :  { %v2135_v15 = vadd.f32 %v2946_v12, %v2094_v14 }
 0x1a7   :  { %v2963_v16 = vpop.f32.mrb[20].mxu0 }
 0x1a8   :  { %v2985_v17 = vpop.f32.mrb[20].mxu1  ;;  %v2964_v18 = vpop.f32.mrb[21].mxu0 }
 0x1a9   :  { %v2986_v19 = vpop.f32.mrb[21].mxu1  ;;  %v2965_v20 = vadd.f32 %v2964_v18, %v2963_v16  ;;  %v2966_v22 = vpop.f32.mrb[22].mxu0 }
 0x1aa   :  { %v2987_v21 = vadd.f32 %v2986_v19, %v2985_v17  ;;  %v2988_v23 = vpop.f32.mrb[22].mxu1  ;;  %v2967_v24 = vpop.f32.mrb[23].mxu0 }
 0x1ab   :  { %v2989_v25 = vpop.f32.mrb[23].mxu1  ;;  %v2173_v26 = vadd.f32 %v2965_v20, %v2132_v13  ;;  %v2968_v27 = vadd.f32 %v2967_v24, %v2966_v22 }
 0x1ac   :  { %v2990_v28 = vadd.f32 %v2989_v25, %v2988_v23 }
 0x1ad   :  { %v2214_v29 = vadd.f32 %v2987_v21, %v2173_v26  ;;  %v2176_v30 = vadd.f32 %v2968_v27, %v2135_v15 }
 0x1af   :  { %vm2220_vm1 = vcmp.gt.f32.partialorder %v2214_v29, 0.0  ;;  %vm2222_vm2 = vcmp.lt.f32.partialorder %v2214_v29, 0.0  ;;  %v2217_v31 = vadd.f32 %v2990_v28, %v2176_v30 }
 0x1b0   :  { %v2224_v32 = vsel %vm2222_vm2, -1.0, %v3289_v2 }
 0x1b1   :  { %v2226_v33 = vsel %vm2220_vm1, 1.0, %v2224_v32  ;;  %vm2221_vm3 = vcmp.gt.f32.partialorder %v2217_v31, 0.0  ;;  %vm2223_vm4 = vcmp.lt.f32.partialorder %v2217_v31, 0.0 }
 0x1b2   :  { %v2225_v34 = vsel %vm2223_vm4, -1.0, %v3289_v2  ;;  %v2228_v36 = vmul.f32 0.2236, %v2226_v33 }
 0x1b3   :  { %v2227_v35 = vsel %vm2221_vm3, 1.0, %v2225_v34 }
 0x1b4   :  { %v2229_v37 = vmul.f32 0.2236, %v2227_v35 }
 0x1b6   :  { %v2230_v38 = vpack.c.bf16 %v2229_v37, %v2228_v36 }
 0x1b8   :  { %3026 = vmatmul.mubr.bf16.vlgmr.msra.gmra.mrb[24].mxu0 %v2230_v38 }
 0x28b   :  { %v2336_v43 = vpop.f32.mrb[24].mxu0 }
 0x28c   :  { %v2337_v44 = vadd.f32 %v2702_v42, %v2336_v43  ;;  %v3027_v45 = vpop.f32.mrb[25].mxu0 }
 0x28d   :  { %v2339_v46 = vpop.f32.mrb[26].mxu0 }
 0x28e   :  { %vm2343_vm5 = vcmp.gt.f32.partialorder %v2337_v44, 0.0  ;;  %vm2345_vm6 = vcmp.lt.f32.partialorder %v2337_v44, 0.0  ;;  %v2340_v47 = vadd.f32 %v2702_v42, %v2339_v46  ;;  %v3028_v48 = vpop.f32.mrb[27].mxu0 }
 0x28f   :  { %v2347_v49 = vsel %vm2345_vm6, -1.0, %v3289_v2 }
 0x290   :  { %v2349_v50 = vsel %vm2343_vm5, 1.0, %v2347_v49  ;;  %vm2344_vm7 = vcmp.gt.f32.partialorder %v2340_v47, 0.0  ;;  %vm2346_vm8 = vcmp.lt.f32.partialorder %v2340_v47, 0.0 }
 0x291   :  { %v2348_v51 = vsel %vm2346_vm8, -1.0, %v3289_v2  ;;  %v2351_v53 = vmul.f32 0.2236, %v2349_v50 }
 0x292   :  { %v2350_v52 = vsel %vm2344_vm7, 1.0, %v2348_v51 }
 0x293   :  { %v2352_v54 = vmul.f32 0.2236, %v2350_v52 }
 0x295   :  { %v2353_v55 = vpack.c.bf16 %v2352_v54, %v2351_v53 }
 0x297   :  { %3046 = vmatmul.mubr.bf16.vlgmr.msra.gmra.mrb[24].mxu1 %v2353_v55 }
 0x36a   :  { %v2459_v57 = vpop.f32.mrb[24].mxu1 }
 0x36b   :  { %v2460_v58 = vadd.f32 %v2711_v56, %v2459_v57  ;;  %v3047_v59 = vpop.f32.mrb[25].mxu1 }
 0x36c   :  { %v2462_v60 = vpop.f32.mrb[26].mxu1 }
 0x36d   :  { %vm2466_vm9 = vcmp.gt.f32.partialorder %v2460_v58, 0.0  ;;  %v2463_v61 = vadd.f32 %v2711_v56, %v2462_v60  ;;  %v3048_v62 = vpop.f32.mrb[27].mxu1 }
 0x36e   :  { %v2468_v63 = vsel %vm2466_vm9, 1.0, %v3289_v2 }
 0x36f   :  { %vm2467_vm10 = vcmp.gt.f32.partialorder %v2463_v61, 0.0 }
 0x370   :  { %v2469_v0 = vsel %vm2467_vm10, 1.0, %v3289_v2 }
 0x371   :  { %v2725_v1 = vpack.c.bf16 %v2469_v0, %v2468_v63 }
 0x373   :  { %2726 = vst [vmem:[%s3506_s7] sm:$0xff] %v2725_v1  }
 0x374   :  { %2484 = vsyncpa [#allocation3], 1 }

</bundles_post_ra>
